<compile_context>
chip_gen: v6e
topology: v6e:2x2x1
jax: 0.10.0
libtpu: 0.0.40
codegen_flags: <defaults>
</compile_context>

<pallas_src>
import jax
import jax.numpy as jnp
from jax.experimental import pallas as pl
from jax.experimental.pallas import tpu as pltpu

_NEG_BIG = -1e30  # finite "minus infinity": exp underflows to 0, no inf-inf NaNs


# ----------------------------------------------------------------------------
# Kernel: one (row-tile, vocab-tile) step of fused linear + online log-sum-exp
# ----------------------------------------------------------------------------
def _lm_head_kernel(x_ref, w_ref, b_ref, logits_ref, lse_ref, m_ref, l_ref):
    """x_ref:(TM,E) f32, w_ref:(E,TN) bf16, b_ref:(1,TN) f32,
    logits_ref:(TM,TN) f32 (fresh block per (i,j)),
    lse_ref:(TM,1) f32 (resident across the vocab axis),
    m_ref/l_ref:(TM,1) f32 running max / running sum-exp scratch."""
    j = pl.program_id(1)
    nj = pl.num_programs(1)

    @pl.when(j == 0)
    def _init():
        m_ref[...] = jnp.full_like(m_ref, _NEG_BIG)
        l_ref[...] = jnp.zeros_like(l_ref)

    # MXU matmul: in-kernel bf16 cast of activations (weight arrives bf16),
    # f32 accumulation; all softmax math stays f32.
    logits = jnp.dot(x_ref[...].astype(jnp.bfloat16), w_ref[...],
                     preferred_element_type=jnp.float32) + b_ref[...]

    # Lane-dense raw-logit store; normalization is fused downstream.
    logits_ref[...] = logits

    # Flash-style online max / sum-exp over the vocab tiles.
    m_old = m_ref[...]
    m_new = jnp.maximum(m_old, jnp.max(logits, axis=-1, keepdims=True))
    l_ref[...] = (l_ref[...] * jnp.exp(m_old - m_new)
                  + jnp.sum(jnp.exp(logits - m_new), axis=-1, keepdims=True))
    m_ref[...] = m_new

    @pl.when(j == nj - 1)
    def _finalize():
        lse_ref[...] = m_ref[...] + jnp.log(l_ref[...])


# ----------------------------------------------------------------------------
# Tiling / hardware heuristics
# ----------------------------------------------------------------------------
def _round_up(x, m):
    return ((x + m - 1) // m) * m


def _vmem_capacity_bytes():
    try:
        cap = int(pltpu.get_tpu_info().vmem_capacity_bytes)
        if cap > 0:
            return cap
    except Exception:
        pass
    return 64 * 1024 * 1024  # conservative (v7x-sized) default


def _pick_vocab_tile(v, tn_max=1024):
    """Lane-aligned vocab tile; callers pad V up to a multiple of it."""
    if v <= tn_max:
        return _round_up(v, 128)
    return tn_max


def _pick_row_tile(rows, tm_max):
    """Largest row tile that still leaves >= 2 row tiles (megacore) when possible."""
    tm = tm_max
    while tm > 8 and pl.cdiv(rows, tm) < 2:
        tm //= 2
    return tm


# ----------------------------------------------------------------------------
# One-time parameter preparation (outside the per-forward path)
# ----------------------------------------------------------------------------
def prepare_lm_head_params(w, b, *, tn_max=1024):
    """w:(E,V) f32, b:(V,) f32 -> vocab-padded bf16 weight and (1,Vp) f32 bias.

    Padded vocab columns get zero weight and bias=-1e30 so they contribute
    exactly 0 to the log-sum-exp and are sliced off after the kernel."""
    _, V = w.shape
    tn = _pick_vocab_tile(V, tn_max)
    v_pad = pl.cdiv(V, tn) * tn
    w_bf = w.astype(jnp.bfloat16)
    b_f = b.astype(jnp.float32)
    if v_pad != V:
        w_bf = jnp.pad(w_bf, ((0, 0), (0, v_pad - V)))
        b_f = jnp.pad(b_f, (0, v_pad - V), constant_values=_NEG_BIG)
    return w_bf, b_f.reshape(1, v_pad)


# ----------------------------------------------------------------------------
# Fused LM-head: raw logits + log-sum-exp
# ----------------------------------------------------------------------------
def lm_head_logits_lse(x, w_bf, b2):
    """x:(R,E) f32, w_bf:(E,Vp) bf16, b2:(1,Vp) f32 ->
    (raw logits (R,Vp) f32, log-sum-exp (R,1) f32)."""
    R, E = x.shape
    Vp = w_bf.shape[1]
    tn = _pick_vocab_tile(Vp)            # Vp is already a multiple of tn
    cap = _vmem_capacity_bytes()
    tm_max = 512 if cap >= (96 << 20) else 256   # v5e/v6e vs v7x
    tm = _pick_row_tile(R, tm_max)

    r_pad = pl.cdiv(R, tm) * tm
    if r_pad != R:
        # Padded rows (zero activations) have a well-defined log-softmax and
        # are sliced off below -- no masking needed inside the kernel.
        x = jnp.pad(x, ((0, r_pad - R), (0, 0)))

    # NOTE: pipeline_mode=pl.Buffered(3) on the weight spec is a cheap extra
    # tunable when E is small and the per-step DMA is exposed; left at the
    # default double-buffering here.
    logits, lse = pl.pallas_call(
        _lm_head_kernel,
        out_shape=(jax.ShapeDtypeStruct((r_pad, Vp), jnp.float32),
                   jax.ShapeDtypeStruct((r_pad, 1), jnp.float32)),
        grid_spec=pltpu.PrefetchScalarGridSpec(
            num_scalar_prefetch=0,
            grid=(r_pad // tm, Vp // tn),
            in_specs=[
                pl.BlockSpec((tm, E), lambda i, j: (i, 0)),   # activations (f32)
                pl.BlockSpec((E, tn), lambda i, j: (0, j)),   # weight tile (bf16)
                pl.BlockSpec((1, tn), lambda i, j: (0, j)),   # bias tile (f32)
            ],
            out_specs=[
                pl.BlockSpec((tm, tn), lambda i, j: (i, j)),  # raw logits
                pl.BlockSpec((tm, 1), lambda i, j: (i, 0)),   # log-sum-exp
            ],
            scratch_shapes=[pltpu.VMEM((tm, 1), jnp.float32),   # running max
                            pltpu.VMEM((tm, 1), jnp.float32)],  # running sum-exp
        ),
        compiler_params=pltpu.CompilerParams(
            dimension_semantics=("parallel", "arbitrary"),
            vmem_limit_bytes=int(cap * 0.8),
        ),
    )(x, w_bf, b2)
    return logits[:R], lse[:R]


# ----------------------------------------------------------------------------
# Full forward pass
# ----------------------------------------------------------------------------
def language_model_forward(token_ids, embed_table, w_bf, b2):
    """token_ids:(B,T) int32, embed_table:(V,E) f32 (ELMo stand-in),
    w_bf:(E,Vp) bf16 / b2:(1,Vp) f32 from prepare_lm_head_params.
    Returns (B, V, T-1) f32 log-probs (matches the PyTorch module)."""
    B, T = token_ids.shape
    V = embed_table.shape[0]

    # "ELMo" head stand-in: embedding lookup -> (B, T, E)   [plain-JAX glue]
    elmo_out = jnp.take(embed_table, token_ids, axis=0)

    # Drop the last time step before the kernel (reference discards it anyway).
    flat = elmo_out[:, :-1, :].reshape(B * (T - 1), -1)

    logits, lse = lm_head_logits_lse(flat, w_bf, b2)      # (R, Vp), (R, 1)
    logits = logits[:, :V].reshape(B, T - 1, V)
    lse = lse.reshape(B, T - 1, 1)

    # log_softmax = logits - lse, fused by XLA into the permute(0, 2, 1) pass
    # the module requires anyway.  (Transpose stays in XLA: T-1 as the minor
    # dim would be lane-sparse inside the kernel.)
    return jnp.transpose(logits - lse, (0, 2, 1))


if __name__ == "__main__":
    # Small, deterministic configuration.
    batch, seq_len = 2, 8
    vocab_size, embedding_dim = 256, 32

    key = jax.random.PRNGKey(0)
    k_tok, k_emb, k_w, k_b = jax.random.split(key, 4)

    token_ids = jax.random.randint(k_tok, (batch, seq_len), 0, vocab_size,
                                   dtype=jnp.int32)
    embed_table = jax.random.normal(k_emb, (vocab_size, embedding_dim),
                                    dtype=jnp.float32) * 0.1
    # nn.Linear(embedding_dim, vocab_size): stored as (E, V) for x @ W
    w = jax.random.normal(k_w, (embedding_dim, vocab_size),
                          dtype=jnp.float32) * 0.1
    b = jax.random.normal(k_b, (vocab_size,), dtype=jnp.float32) * 0.1

    # One-time parameter prep (bf16 cast + vocab padding) outside the forward.
    w_bf, b2 = prepare_lm_head_params(w, b)

    fwd = jax.jit(language_model_forward)
    out = jax.block_until_ready(fwd(token_ids, embed_table, w_bf, b2))

    # Pure-JAX f32 reference (kernel uses bf16 matmul inputs -> looser atol).
    elmo_ref = jnp.take(embed_table, token_ids, axis=0)
    ref = jax.nn.log_softmax(elmo_ref @ w + b, axis=2)
    ref = jnp.transpose(ref, (0, 2, 1))[:, :, :-1]

    assert out.shape == (batch, vocab_size, seq_len - 1), out.shape
    max_err = float(jnp.max(jnp.abs(out - ref)))
    assert jnp.allclose(out, ref, atol=2e-2), f"mismatch vs reference: {max_err}"

    print("KERNEL_OK")
</pallas_src>

<mosaic_0001>
module attributes {stable_mosaic.version = 11 : i64} {
  func.func @_lm_head_kernel(%arg0: i32, %arg1: i32, %arg2: memref<8x32xf32, #tpu.memory_space<vmem>>, %arg3: memref<32x256xbf16, #tpu.memory_space<vmem>>, %arg4: memref<1x256xf32, #tpu.memory_space<vmem>>, %arg5: memref<8x256xf32, #tpu.memory_space<vmem>>, %arg6: memref<8x1xf32, #tpu.memory_space<vmem>>, %arg7: memref<8x1xf32, #tpu.memory_space<vmem>>, %arg8: memref<8x1xf32, #tpu.memory_space<vmem>>) attributes {dimension_semantics = [#tpu.dimension_semantics<parallel>, #tpu.dimension_semantics<arbitrary>], iteration_bounds = array<i64: 2, 1>, scalar_prefetch = 0 : i64, scratch_operands = 2 : i64, tpu.core_type = #tpu.core_type<tc>, window_params = [{transform_indices = @transform_0, window_bounds = array<i64: 8, 32>}, {transform_indices = @transform_1, window_bounds = array<i64: 32, 256>}, {transform_indices = @transform_2, window_bounds = array<i64: 1, 256>}, {transform_indices = @transform_3, window_bounds = array<i64: 8, 256>}, {transform_indices = @transform_4, window_bounds = array<i64: 8, 1>}]} {
    %c0_i32 = arith.constant 0 : i32
    %0 = arith.cmpi eq, %arg1, %c0_i32 : i32
    %1 = arith.extui %0 : i1 to i32
    %c0_i32_0 = arith.constant 0 : i32
    %2 = arith.cmpi ne, %1, %c0_i32_0 : i32
    scf.if %2 {
      %cst_20 = arith.constant -1.000000e+30 : f32
      %30 = vector.broadcast %cst_20 : f32 to vector<8x1xf32>
      %c0_21 = arith.constant 0 : index
      %c0_22 = arith.constant 0 : index
      %31 = vector.load %arg7[%c0_21, %c0_22] : memref<8x1xf32, #tpu.memory_space<vmem>>, vector<8x1xf32>
      tpu.vector_store %arg7[%c0_21, %c0_22], %30 {strides = array<i32>} : memref<8x1xf32, #tpu.memory_space<vmem>>, vector<8x1xf32>,
      %cst_23 = arith.constant 0.000000e+00 : f32
      %32 = vector.broadcast %cst_23 : f32 to vector<8x1xf32>
      %c0_24 = arith.constant 0 : index
      %c0_25 = arith.constant 0 : index
      %33 = vector.load %arg8[%c0_24, %c0_25] : memref<8x1xf32, #tpu.memory_space<vmem>>, vector<8x1xf32>
      tpu.vector_store %arg8[%c0_24, %c0_25], %32 {strides = array<i32>} : memref<8x1xf32, #tpu.memory_space<vmem>>, vector<8x1xf32>,
    } else {
    }
    %c0 = arith.constant 0 : index
    %c0_1 = arith.constant 0 : index
    %3 = vector.load %arg2[%c0, %c0_1] : memref<8x32xf32, #tpu.memory_space<vmem>>, vector<8x32xf32>
    %4 = arith.truncf %3 : vector<8x32xf32> to vector<8x32xbf16>
    %c0_2 = arith.constant 0 : index
    %c0_3 = arith.constant 0 : index
    %5 = vector.load %arg3[%c0_2, %c0_3] : memref<32x256xbf16, #tpu.memory_space<vmem>>, vector<32x256xbf16>
    %cst = arith.constant dense<0.000000e+00> : vector<8x256xf32>
    %6 = tpu.matmul %4, %5, %cst {dimension_numbers = #tpu.dot_dimension_numbers<[1], [0], [0], [1], [0, 0, 1, 1], [], []>} : vector<8x32xbf16>, vector<32x256xbf16>, vector<8x256xf32> -> vector<8x256xf32>
    %c0_4 = arith.constant 0 : index
    %c0_5 = arith.constant 0 : index
    %7 = vector.load %arg4[%c0_4, %c0_5] : memref<1x256xf32, #tpu.memory_space<vmem>>, vector<1x256xf32>
    %8 = vector.broadcast %7 : vector<1x256xf32> to vector<8x256xf32>
    %9 = arith.addf %6, %8 : vector<8x256xf32>
    %c0_6 = arith.constant 0 : index
    %c0_7 = arith.constant 0 : index
    %10 = vector.load %arg5[%c0_6, %c0_7] : memref<8x256xf32, #tpu.memory_space<vmem>>, vector<8x256xf32>
    tpu.vector_store %arg5[%c0_6, %c0_7], %9 {strides = array<i32>} : memref<8x256xf32, #tpu.memory_space<vmem>>, vector<8x256xf32>,
    %c0_8 = arith.constant 0 : index
    %c0_9 = arith.constant 0 : index
    %11 = vector.load %arg7[%c0_8, %c0_9] : memref<8x1xf32, #tpu.memory_space<vmem>>, vector<8x1xf32>
    %cst_10 = arith.constant dense<0xFF800000> : vector<8xf32>
    %12 = vector.multi_reduction <maximumf>, %9, %cst_10 [1] : vector<8x256xf32> to vector<8xf32>
    %13 = vector.shape_cast %12 : vector<8xf32> to vector<8x1xf32>
    %14 = arith.maximumf %11, %13 : vector<8x1xf32>
    %c0_11 = arith.constant 0 : index
    %c0_12 = arith.constant 0 : index
    %15 = vector.load %arg8[%c0_11, %c0_12] : memref<8x1xf32, #tpu.memory_space<vmem>>, vector<8x1xf32>
    %16 = arith.subf %11, %14 : vector<8x1xf32>
    %17 = math.exp %16 : vector<8x1xf32>
    %18 = arith.mulf %15, %17 : vector<8x1xf32>
    %19 = vector.broadcast %14 : vector<8x1xf32> to vector<8x256xf32>
    %20 = arith.subf %9, %19 : vector<8x256xf32>
    %21 = math.exp %20 : vector<8x256xf32>
    %cst_13 = arith.constant dense<0.000000e+00> : vector<8xf32>
    %22 = vector.multi_reduction <add>, %21, %cst_13 [1] : vector<8x256xf32> to vector<8xf32>
    %23 = vector.shape_cast %22 : vector<8xf32> to vector<8x1xf32>
    %24 = arith.addf %18, %23 : vector<8x1xf32>
    %c0_14 = arith.constant 0 : index
    %c0_15 = arith.constant 0 : index
    %25 = vector.load %arg8[%c0_14, %c0_15] : memref<8x1xf32, #tpu.memory_space<vmem>>, vector<8x1xf32>
    tpu.vector_store %arg8[%c0_14, %c0_15], %24 {strides = array<i32>} : memref<8x1xf32, #tpu.memory_space<vmem>>, vector<8x1xf32>,
    %c0_16 = arith.constant 0 : index
    %c0_17 = arith.constant 0 : index
    %26 = vector.load %arg7[%c0_16, %c0_17] : memref<8x1xf32, #tpu.memory_space<vmem>>, vector<8x1xf32>
    tpu.vector_store %arg7[%c0_16, %c0_17], %14 {strides = array<i32>} : memref<8x1xf32, #tpu.memory_space<vmem>>, vector<8x1xf32>,
    %c0_i32_18 = arith.constant 0 : i32
    %27 = arith.cmpi eq, %arg1, %c0_i32_18 : i32
    %28 = arith.extui %27 : i1 to i32
    %c0_i32_19 = arith.constant 0 : i32
    %29 = arith.cmpi ne, %28, %c0_i32_19 : i32
    scf.if %29 {
      %c0_20 = arith.constant 0 : index
      %c0_21 = arith.constant 0 : index
      %30 = vector.load %arg7[%c0_20, %c0_21] : memref<8x1xf32, #tpu.memory_space<vmem>>, vector<8x1xf32>
      %c0_22 = arith.constant 0 : index
      %c0_23 = arith.constant 0 : index
      %31 = vector.load %arg8[%c0_22, %c0_23] : memref<8x1xf32, #tpu.memory_space<vmem>>, vector<8x1xf32>
      %32 = math.log %31 : vector<8x1xf32>
      %33 = arith.addf %30, %32 : vector<8x1xf32>
      %c0_24 = arith.constant 0 : index
      %c0_25 = arith.constant 0 : index
      %34 = vector.load %arg6[%c0_24, %c0_25] : memref<8x1xf32, #tpu.memory_space<vmem>>, vector<8x1xf32>
      tpu.vector_store %arg6[%c0_24, %c0_25], %33 {strides = array<i32>} : memref<8x1xf32, #tpu.memory_space<vmem>>, vector<8x1xf32>,
    } else {
    }
    return
  }
  func.func @transform_0(%arg0: i32, %arg1: i32) -> (i32, i32) {
    %c0_i32 = arith.constant 0 : i32
    %c0_i32_0 = arith.constant 0 : i32
    return %arg0, %c0_i32 : i32, i32
  }
  func.func @transform_1(%arg0: i32, %arg1: i32) -> (i32, i32) {
    %c0_i32 = arith.constant 0 : i32
    %c0_i32_0 = arith.constant 0 : i32
    return %c0_i32, %arg1 : i32, i32
  }
  func.func @transform_2(%arg0: i32, %arg1: i32) -> (i32, i32) {
    %c0_i32 = arith.constant 0 : i32
    %c0_i32_0 = arith.constant 0 : i32
    return %c0_i32, %arg1 : i32, i32
  }
  func.func @transform_3(%arg0: i32, %arg1: i32) -> (i32, i32) {
    %c0_i32 = arith.constant 0 : i32
    return %arg0, %arg1 : i32, i32
  }
  func.func @transform_4(%arg0: i32, %arg1: i32) -> (i32, i32) {
    %c0_i32 = arith.constant 0 : i32
    %c0_i32_0 = arith.constant 0 : i32
    return %arg0, %c0_i32 : i32, i32
  }
}

</mosaic_0001>

<bundles_post_ra>
// kernel: sub.5
= control target key start
LH: loop header
LB: loop body
LE: loop exit
PB: predicated region body
PF: predicated region fallthrough
CT: control target
= control target key end

     0   :  { %vm8_vm0 = vcmask 56320   ;;  %s42_s0 = inlined_call_operand.vmem [shape: f32[14], index: 0, kind: input, shape index: {}]   ;;  %s43_s1 = inlined_call_operand.vmem [shape: f32[2,7], index: 1, kind: output, shape index: {}]  }
   0x1   :  { %v5_v0 = vld [vmem:[%s42_s0] sm:$0x1]  ;;  %s25_s0 = smov 121  }
   0x2   :  { %6 = vst [vmem:[#allocation1] sm:$0x1] %v5_v0 }
   0x9   :  { %v10_v1 = vld [vmem:[#allocation1] sm:$0x1]  }
   0xa   :  { %v7_v2 = vld [vmem:[#allocation1] sm:$0x1]   ;;  %11 = vrot.lane.b32.xlu0 %v10_v1, %s25_s0 }
   0xb   :  { %9 = vst.msk [vmem:[#allocation0] sm:$0x1] %vm8_vm0, %v7_v2  }
  0x7c   :  { %v12_v3 = vpop.permute.xlu0 %11  }
  0x7d   :  { %15 = vst.msk [vmem:[#allocation0 + $0x1] sm:$0x1] %vm8_vm0, %v12_v3  }
  0x84   :  { %v20_v4 = vld [vmem:[#allocation0] sm:$0x3] }
  0x85   :  { %23 = vst [vmem:[%s43_s1] sm:$0x3] %v20_v4 }

// kernel: language_model_forward.1
= control target key start
LH: loop header
LB: loop body
LE: loop exit
PB: predicated region body
PF: predicated region fallthrough
CT: control target
= control target key end

     0   :  { %s652_s15 = smov 0   ;;  %s654_s16 = smov 0   ;;  %s716_s0 = inlined_call_operand.vmem [shape: f32[16,32], index: 0, kind: input, shape index: {}]   ;;  %s717_s1 = inlined_call_operand.vmem [shape: bf16[32,256], index: 1, kind: input, shape index: {}]   ;;  %s718_s2 = inlined_call_operand.vmem [shape: f32[1,256], index: 2, kind: input, shape index: {}]   ;;  %s719_s3 = inlined_call_operand.vmem [shape: f32[16,256], index: 3, kind: output, shape index: {0}]   ;;  %s720_s4 = inlined_call_operand.vmem [shape: f32[16,1], index: 4, kind: output, shape index: {1}]  }
   0x1   :  { %s656_s17 = smov 0  }
   0x2 LB: > { %s27_s18 = sadd.s32 1, %s618_s16  ;;  %p545_p0 = scmp.ge.s32.totalorder %s622_s17, 1  ;;  %s622_s17 = sphi %s656_s17, %s15_s17   ;;  %s618_s16 = sphi %s654_s16, %s722_s16   ;;  %s614_s15 = sphi %s652_s15, %s721_s15  }
   0x3   : > { %p29_p1 = scmp.ge.s32.totalorder %s27_s18, 2  ;;  %p199_p2 = scmp.lt.s32.totalorder %s622_s17, 3 }
   0x5   : > { %s724_s18 = smov (%p29_p1, %s27_s18), 0  ;;  %p200_p3 = pnand %p545_p0, %p199_p2 }
   0x6   : > { %p241_p4 = scmp.lt.s32.totalorder (!%p200_p3), %s614_s15, 1 }
   0x7   : > { %203 = sbr.rel (%p200_p3) target bundleno = 673 (0x2a1), region = 32 }
   0xc   : > { %v586_v0 = vld [vmem:[%s717_s1 + $0x14] ss:$8 sps:$4 sm:$0xff]   ;;  %v588_v1 = vld [vmem:[%s717_s1 + $0x10] ss:$8 sps:$4 sm:$0xff]   ;;  %v624_v2 = vmov 0   ;;  %s726_s15 = smov (!%p241_p4, %s614_s15), 1  ;;  %v286_v8 = vlaneseq }
   0xd   : > { %352 = vmatprep.mubr.bf16.mxu0 %v624_v2  ;;  %585 = vset.pattern.permute.xlu0 %v624_v2  ;;  %v589_v3 = vld [vmem:[%s717_s1 + $0x4] ss:$8 sps:$4 sm:$0xff]   ;;  %v591_v4 = vld [vmem:[%s717_s1] ss:$8 sps:$4 sm:$0xff]   ;;  %s546_s27 = sshll.u32 %s726_s15, 3  ;;  %vm316_vm0 = vcmask 261120  }
   0xe   : > { %332 = vmatprep.subr.bf16.mxu0 %v586_v0  ;;  %s244_s30 = scalar_lea.vmem %s716_s0, %s546_s27  ;;  %vm275_vm1 = vcmask 7168   ;;  %v625_v7 = vmov -1e+30   ;;  %v287_v9 = vshrl.u32 %v286_v8, 7  ;;  %v284_v11 = vld [vmem:[%s718_s2] sm:$0x3]  ;;  %s269_s13 = scalar_lea.vmem %s720_s4, %s546_s27 }
   0xf   : > { %333 = vmatpush1.bf16.msra.mxu0 %v588_v1  ;;  %v278_v5 = vld [vmem:[%s244_s30] sm:$0xff]  ;;  %276 = vst.msk [vmem:[#allocation2] sm:$0xff] %vm275_vm1, %v625_v7  ;;  %s557_s7 = sshll.u32 %s726_s15, 4  ;;  %v626_v22 = vmov 0.0  }
  0x10   : > { %334 = vmatprep.subr.bf16.mxu0 %v589_v3  ;;  %v279_v6 = vpack.c.bf16 %v278_v5, %v278_v5  ;;  %v288_v10 = vsub.s32 0, %v287_v9  ;;  %v292_v12 = vsub.s32 1, %v287_v9  ;;  %s264_s10 = scalar_lea.vmem %s719_s3, %s557_s7  ;;  %277 = vst.msk [vmem:[#allocation3] sm:$0xff] %vm275_vm1, %v626_v22 }
  0x12   : > { %v289_v13 = vrot.slane %v284_v11, %v288_v10  ;;  %v293_v14 = vrot.slane %v284_v11, %v292_v12 }
  0x13   : > { %335 = vmatpush1.bf16.msra.mxu0 %v591_v4 }
  0x16   : > { %554 = vmatmul.mubr.msk.bf16.vlgmr.msra.gmra.mxu0 %vm316_vm0, %v279_v6  ;;  %v363_v23 = vld [vmem:[#allocation2] sm:$0xff] }
  0x17   : > { %v368_v37 = vld [vmem:[#allocation3] sm:$0xff] }
  0xd6   : > { %v354_v15 = vpop.f32.mrf.mxu0 }
  0xd7   : > { %v355_v16 = vadd.f32 %v354_v15, %v289_v13 }
  0xd8   : > { %v356_v17 = vpop.f32.mrf.mxu0 }
  0xd9   : > { %361 = vst [vmem:[%s264_s10] sm:$0xff] %v355_v16  ;;  %v357_v18 = vadd.f32 %v356_v17, %v293_v14 }
  0xda   : > { %v358_v19 = vpop.f32.mrf.mxu0 }
  0xdb   : > { %362 = vst [vmem:[%s264_s10 + $0x8] sm:$0xff] %v357_v18  ;;  %v364_v20 = vmax.f32 %v355_v16, %v357_v18 }
  0xdc   : > { %v359_v21 = vpop.f32.mrf.mxu0 }
  0xdd   : > { %365 = vmax.xlane.f32.xlu0 %v364_v20 }
 0x166   : > { %v366_v24 = vpop.xlane.xlu0 %365 }
 0x167   : > { %v367_v25 = vmax.f32 %v363_v23, %v366_v24 }
 0x169   : > { %v369_v26 = vsub.f32 %v363_v23, %v367_v25  ;;  %390 = vst.msk [vmem:[#allocation2] sm:$0xff] %vm275_vm1, %v367_v25  ;;  %375 = vperm.xlu0 %585, %v367_v25  }
 0x16b   : > { %v370_v35 = vmul.f32 1.442695, %v369_v26 }
 0x170   : > { %v394_v44 = vld [vmem:[#allocation2] sm:$0xff] }
 0x1e4   : > { %v376_v27 = vpop.permute.xlu0 %375 }
 0x1e5   : > { %v378_v28 = vsub.f32 %v355_v16, %v376_v27  ;;  %v379_v29 = vsub.f32 %v357_v18, %v376_v27 }
 0x1e7   : > { %v380_v30 = vmul.f32 1.442695, %v378_v28  ;;  %v382_v31 = vmul.f32 1.442695, %v379_v29 }
 0x1e9   : > { %592 = vpow2.f32 %v380_v30 }
 0x1ea   : > { %594 = vpow2.f32 %v382_v31 }
 0x1eb   : > { %596 = vpow2.f32 %v370_v35 }
 0x1f6   : > { %v593_v32 = vpop.eup %592 }
 0x1f7   : > { %v595_v33 = vpop.eup %594 }
 0x1f8   : > { %v384_v34 = vadd.f32 %v595_v33, %v593_v32  ;;  %v597_v36 = vpop.eup %596 }
 0x1f9   : > { %v372_v38 = vmul.f32 %v597_v36, %v368_v37 }
 0x1fa   : > { %385 = vadd.xlane.f32.xlu1 %v384_v34 }
 0x283   : > { %v386_v39 = vpop.xlane.xlu1 %385 }
 0x284   : > { %v387_v40 = vadd.f32 %v386_v39, %v372_v38 }
 0x286   : > { %389 = vst.msk [vmem:[#allocation3] sm:$0xff] %vm275_vm1, %v387_v40 }
 0x28d   : > { %v395_v41 = vld [vmem:[#allocation3] sm:$0xff] }
 0x28e   : > { %598 = vlog2.f32 %v395_v41 }
 0x29b   : > { %v599_v42 = vpop.eup %598 }
 0x29c   : > { %v397_v43 = vmul.f32 0.6931472, %v599_v42 }
 0x29e   : > { %v398_v45 = vadd.f32 %v397_v43, %v394_v44 }
 0x2a0   : > { %399 = vst.msk [vmem:[%s269_s13] sm:$0xff] %vm275_vm1, %v398_v45 }
 0x2a1 PF: > { %s15_s17 = sadd.s32 1, %s622_s17   ;;  %s721_s15 = smov %s618_s16 }
 0x2a2   : > { %p12_p5 = scmp.ge.s32.totalorder %s15_s17, 4   ;;  %s722_s16 = smov %s724_s18 }
 0x2a4   :  { %14 = sbr.rel (!%p12_p5) target bundleno = 2 (0x2), region = 88 }

</bundles_post_ra>
